<compile_context>
chip_gen: v6e
topology: v6e:2x2x1
jax: 0.10.0
libtpu: 0.0.40
codegen_flags: <defaults>
</compile_context>

<pallas_src>
import functools

import jax
import jax.numpy as jnp
from jax.experimental import pallas as pl
from jax.experimental.pallas import tpu as pltpu


def _down_kernel(x_ref, pool_ref, w1_ref, b1_ref, w2_ref, b2_ref, mask_ref,
                 osel_ref, o_ref, buf1, buf2, *, img_w, hp, wp):
    """Fused maxpool(2) + (conv3x3 + folded-BN + ReLU) x 2 for one batch image.

    x_ref   : (C_in, H*W)         lane-flat input image
    pool_ref: (H*W - W - 1, L)    0/1 scatter: pooled lane -> padded-grid column
    w1_ref  : (C_out, 9*C_in)     conv1 weights (BN folded), col = tap*C_in + c
    b1_ref  : (C_out, 1)          conv1 bias (BN folded)
    w2_ref  : (C_out, 9*C_out)    conv2 weights (BN folded)
    b2_ref  : (C_out, 1)          conv2 bias (BN folded)
    mask_ref: (1, L)              1.0 at interior positions of the padded grid
    osel_ref: (L, hp*wp)          0/1 gather: padded-grid interior -> flat output
    o_ref   : (C_out, hp*wp)      lane-flat output image
    buf1    : (C_in,  Lbuf) VMEM  zero-padded pooled input (with tap halo)
    buf2    : (C_out, Lbuf) VMEM  zero-padded conv1 activations (with tap halo)
    """
    c_in, hw = x_ref.shape
    c_out = w1_ref.shape[0]
    wpd = wp + 2
    l = (hp + 2) * wpd              # flattened zero-padded pooled grid length
    margin = wpd + 1                # halo so all 9 tap slices stay in-bounds

    # ---- 2x2 max-pool, fully vectorized --------------------------------------
    x = x_ref[...]                                               # (C_in, H*W)
    m1 = jnp.maximum(x[:, :hw - 1], x[:, 1:])                    # horiz pair max
    m2 = jnp.maximum(m1[:, :hw - img_w - 1], m1[:, img_w:])      # + vert pair max
    # Scatter the hp*wp valid pooled lanes (p = 2i*W + 2j) into the zero-padded
    # conv grid; ring columns of pool_ref are all-zero so padding comes for free.
    pooled = jnp.dot(m2, pool_ref[...],
                     preferred_element_type=jnp.float32)          # (C_in, L)

    zpad_in = jnp.zeros((c_in, margin), jnp.float32)
    buf1[...] = jnp.concatenate([zpad_in, pooled, zpad_in], axis=1)

    # Flat-index offsets of the 9 conv taps (dy, dx) relative to the buffer start.
    taps = [dy * wpd + dx for dy in range(3) for dx in range(3)]

    # ---- conv1 (+ folded BN) + ReLU: in-VMEM im2col -> one lane-dense matmul --
    patches1 = jnp.concatenate([buf1[:, t:t + l] for t in taps], axis=0)  # (9*C_in, L)
    y1 = jnp.dot(w1_ref[...], patches1, preferred_element_type=jnp.float32)
    y1 = jnp.maximum(y1 + b1_ref[...], 0.0) * mask_ref[...]   # ReLU; zero the halo ring

    zpad_out = jnp.zeros((c_out, margin), jnp.float32)
    buf2[...] = jnp.concatenate([zpad_out, y1, zpad_out], axis=1)

    # ---- conv2 (+ folded BN) + ReLU -------------------------------------------
    patches2 = jnp.concatenate([buf2[:, t:t + l] for t in taps], axis=0)  # (9*C_out, L)
    y2 = jnp.dot(w2_ref[...], patches2, preferred_element_type=jnp.float32)
    y2 = jnp.maximum(y2 + b2_ref[...], 0.0)

    # ---- lane-dense gather of the interior + one wide store ---------------------
    o_ref[...] = jnp.dot(y2, osel_ref[...],
                         preferred_element_type=jnp.float32).astype(o_ref.dtype)


def _flatten_conv_weight(wgt):
    """(C_out, C_in, 3, 3) -> (C_out, 9*C_in); column index = (dy*3+dx)*C_in + c."""
    c_out, c_in, kh, kw = wgt.shape
    return jnp.transpose(wgt.reshape(c_out, c_in, kh * kw), (0, 2, 1)).reshape(
        c_out, kh * kw * c_in)


def _fold_bn(wgt, bias, gamma, beta, mean, var, eps):
    """Fold inference-mode BatchNorm (running stats) into conv weight/bias."""
    s = gamma / jnp.sqrt(var + eps)
    return wgt * s[:, None, None, None], (bias - mean) * s + beta


@jax.jit
def down_forward(x, conv1_w, conv1_b, bn1_gamma, bn1_beta, bn1_mean, bn1_var,
                 conv2_w, conv2_b, bn2_gamma, bn2_beta, bn2_mean, bn2_var,
                 eps=1e-5):
    """Matches down(in_ch, out_ch).forward(x) with eval-mode BatchNorm."""
    n, c_in, h, w = x.shape
    c_out = conv1_w.shape[0]
    assert h % 2 == 0 and w % 2 == 0, "MaxPool2d(2) path assumes even H, W"
    hp, wp = h // 2, w // 2
    hpd, wpd = hp + 2, wp + 2
    l = hpd * wpd
    margin = wpd + 1
    lbuf = l + 2 * margin
    hw = h * w

    # Fold BN into the convs and rearrange weights into the matmul layout (tiny).
    w1f, b1f = _fold_bn(conv1_w, conv1_b, bn1_gamma, bn1_beta, bn1_mean, bn1_var, eps)
    w2f, b2f = _fold_bn(conv2_w, conv2_b, bn2_gamma, bn2_beta, bn2_mean, bn2_var, eps)
    w1m = _flatten_conv_weight(w1f)
    w2m = _flatten_conv_weight(w2f)
    b1m = b1f.reshape(c_out, 1)
    b2m = b2f.reshape(c_out, 1)

    # Constant helper operands (tiny, resident in VMEM across grid steps).
    # Pool scatter: max-reduced lane p = 2i*W + 2j -> padded-grid column
    # (i+1)*wpd + (j+1); all other columns stay zero (free zero padding ring).
    src = (2 * jnp.arange(hp)[:, None] * w + 2 * jnp.arange(wp)[None, :]).reshape(-1)
    dst = ((jnp.arange(hp)[:, None] + 1) * wpd
           + (jnp.arange(wp)[None, :] + 1)).reshape(-1)
    pool_mat = jnp.zeros((hw - w - 1, l), jnp.float32).at[src, dst].set(1.0)

    # Interior mask over the padded grid (zero the halo ring after conv1+ReLU).
    idx = jnp.arange(l)
    rr, cc = idx // wpd, idx % wpd
    mask = ((rr >= 1) & (rr <= hp) & (cc >= 1) & (cc <= wp)).astype(
        jnp.float32).reshape(1, l)

    # Output gather: padded-grid interior -> compact lane-flat (hp*wp) output.
    osel = jnp.zeros((l, hp * wp), jnp.float32).at[dst, jnp.arange(hp * wp)].set(1.0)

    # Free metadata-only reshape: NCHW -> lane-flat spatial.
    x_flat = x.reshape(n, c_in, hw)

    kernel = functools.partial(_down_kernel, img_w=w, hp=hp, wp=wp)

    grid_spec = pltpu.PrefetchScalarGridSpec(
        num_scalar_prefetch=0,
        grid=(n,),
        in_specs=[
            pl.BlockSpec((None, c_in, hw), lambda i: (i, 0, 0)),
            pl.BlockSpec((hw - w - 1, l), lambda i: (0, 0)),
            pl.BlockSpec((c_out, 9 * c_in), lambda i: (0, 0)),
            pl.BlockSpec((c_out, 1), lambda i: (0, 0)),
            pl.BlockSpec((c_out, 9 * c_out), lambda i: (0, 0)),
            pl.BlockSpec((c_out, 1), lambda i: (0, 0)),
            pl.BlockSpec((1, l), lambda i: (0, 0)),
            pl.BlockSpec((l, hp * wp), lambda i: (0, 0)),
        ],
        out_specs=pl.BlockSpec((None, c_out, hp * wp), lambda i: (i, 0, 0)),
        scratch_shapes=[
            pltpu.VMEM((c_in, lbuf), jnp.float32),
            pltpu.VMEM((c_out, lbuf), jnp.float32),
        ],
    )

    y_flat = pl.pallas_call(
        kernel,
        out_shape=jax.ShapeDtypeStruct((n, c_out, hp * wp), jnp.float32),
        grid_spec=grid_spec,
        compiler_params=pltpu.CompilerParams(
            dimension_semantics=("parallel",)),   # v7x: batch split across the 2 TCs
    )(x_flat, pool_mat, w1m, b1m, w2m, b2m, mask, osel)

    return y_flat.reshape(n, c_out, hp, wp)


if __name__ == "__main__":
    N, C_in, C_out, H, W = 2, 4, 8, 16, 16
    eps = 1e-5

    key = jax.random.PRNGKey(0)
    keys = jax.random.split(key, 11)

    x = jax.random.normal(keys[0], (N, C_in, H, W), dtype=jnp.float32)

    # Conv params: mimic PyTorch Conv2d default init (uniform +-1/sqrt(fan_in)).
    def conv_init(kw_key, kb_key, co, ci, k=3):
        bound = 1.0 / (ci * k * k) ** 0.5
        wgt = jax.random.uniform(kw_key, (co, ci, k, k), jnp.float32, -bound, bound)
        bias = jax.random.uniform(kb_key, (co,), jnp.float32, -bound, bound)
        return wgt, bias

    w1, b1 = conv_init(keys[1], keys[2], C_out, C_in)
    w2, b2 = conv_init(keys[3], keys[4], C_out, C_out)

    # Non-trivial inference-mode BatchNorm parameters.
    g1 = jax.random.uniform(keys[5], (C_out,), jnp.float32, 0.5, 1.5)
    be1 = jax.random.normal(keys[6], (C_out,), jnp.float32) * 0.1
    m1 = jax.random.normal(keys[7], (C_out,), jnp.float32) * 0.1
    v1 = jax.random.uniform(keys[8], (C_out,), jnp.float32, 0.5, 1.5)
    g2 = jax.random.uniform(keys[9], (C_out,), jnp.float32, 0.5, 1.5)
    be2 = jax.random.normal(keys[10], (C_out,), jnp.float32) * 0.1
    m2 = jnp.zeros((C_out,), jnp.float32)
    v2 = jnp.ones((C_out,), jnp.float32)

    y = down_forward(x, w1, b1, g1, be1, m1, v1, w2, b2, g2, be2, m2, v2, eps)
    jax.block_until_ready(y)

    # Plain-JAX reference of the same `down` forward (eval-mode BN).
    def ref_forward(x_in):
        xp = x_in.reshape(N, C_in, H // 2, 2, W // 2, 2).max(axis=(3, 5))

        def conv_bn_relu(z, wgt, bias, g, be, m, v):
            yy = jax.lax.conv_general_dilated(
                z, wgt, window_strides=(1, 1), padding=((1, 1), (1, 1)),
                dimension_numbers=("NCHW", "OIHW", "NCHW"),
                precision=jax.lax.Precision.HIGHEST)
            yy = yy + bias[None, :, None, None]
            yy = (yy - m[None, :, None, None]) * (
                g[None, :, None, None] / jnp.sqrt(v[None, :, None, None] + eps)
            ) + be[None, :, None, None]
            return jnp.maximum(yy, 0.0)

        t = conv_bn_relu(xp, w1, b1, g1, be1, m1, v1)
        return conv_bn_relu(t, w2, b2, g2, be2, m2, v2)

    ref = ref_forward(x)
    assert y.shape == (N, C_out, H // 2, W // 2)
    max_err = float(jnp.max(jnp.abs(y - ref)))
    assert jnp.allclose(y, ref, atol=1e-3, rtol=1e-3), max_err

    print("KERNEL_OK")
</pallas_src>

<mosaic_0001>
module attributes {stable_mosaic.version = 11 : i64} {
  func.func @_down_kernel(%arg0: i32, %arg1: memref<1x4x256xf32, #tpu.memory_space<vmem>>, %arg2: memref<239x100xf32, #tpu.memory_space<vmem>>, %arg3: memref<8x36xf32, #tpu.memory_space<vmem>>, %arg4: memref<8x1xf32, #tpu.memory_space<vmem>>, %arg5: memref<8x72xf32, #tpu.memory_space<vmem>>, %arg6: memref<8x1xf32, #tpu.memory_space<vmem>>, %arg7: memref<1x100xf32, #tpu.memory_space<vmem>>, %arg8: memref<100x64xf32, #tpu.memory_space<vmem>>, %arg9: memref<1x8x64xf32, #tpu.memory_space<vmem>>, %arg10: memref<4x122xf32, #tpu.memory_space<vmem>>, %arg11: memref<8x122xf32, #tpu.memory_space<vmem>>) attributes {dimension_semantics = [#tpu.dimension_semantics<parallel>], iteration_bounds = array<i64: 2>, scalar_prefetch = 0 : i64, scratch_operands = 2 : i64, tpu.core_type = #tpu.core_type<tc>, window_params = [{transform_indices = @transform_0, window_bounds = array<i64: 1, 4, 256>}, {pipeline_mode = #tpu.pipeline_mode<synchronous>, transform_indices = @transform_1, window_bounds = array<i64: 239, 100>}, {pipeline_mode = #tpu.pipeline_mode<synchronous>, transform_indices = @transform_2, window_bounds = array<i64: 8, 36>}, {pipeline_mode = #tpu.pipeline_mode<synchronous>, transform_indices = @transform_3, window_bounds = array<i64: 8, 1>}, {pipeline_mode = #tpu.pipeline_mode<synchronous>, transform_indices = @transform_4, window_bounds = array<i64: 8, 72>}, {pipeline_mode = #tpu.pipeline_mode<synchronous>, transform_indices = @transform_5, window_bounds = array<i64: 8, 1>}, {pipeline_mode = #tpu.pipeline_mode<synchronous>, transform_indices = @transform_6, window_bounds = array<i64: 1, 100>}, {pipeline_mode = #tpu.pipeline_mode<synchronous>, transform_indices = @transform_7, window_bounds = array<i64: 100, 64>}, {transform_indices = @transform_8, window_bounds = array<i64: 1, 8, 64>}]} {
    %c0 = arith.constant 0 : index
    %c0_0 = arith.constant 0 : index
    %c0_1 = arith.constant 0 : index
    %0 = vector.load %arg1[%c0, %c0_0, %c0_1] : memref<1x4x256xf32, #tpu.memory_space<vmem>>, vector<1x4x256xf32>
    %1 = vector.shape_cast %0 : vector<1x4x256xf32> to vector<4x256xf32>
    %2 = vector.extract_strided_slice %1 {offsets = [0, 0], sizes = [4, 255], strides = [1, 1]} : vector<4x256xf32> to vector<4x255xf32>
    %3 = vector.extract_strided_slice %1 {offsets = [0, 1], sizes = [4, 255], strides = [1, 1]} : vector<4x256xf32> to vector<4x255xf32>
    %4 = arith.maximumf %2, %3 : vector<4x255xf32>
    %5 = vector.extract_strided_slice %4 {offsets = [0, 0], sizes = [4, 239], strides = [1, 1]} : vector<4x255xf32> to vector<4x239xf32>
    %6 = vector.extract_strided_slice %4 {offsets = [0, 16], sizes = [4, 239], strides = [1, 1]} : vector<4x255xf32> to vector<4x239xf32>
    %7 = arith.maximumf %5, %6 : vector<4x239xf32>
    %c0_2 = arith.constant 0 : index
    %c0_3 = arith.constant 0 : index
    %8 = vector.load %arg2[%c0_2, %c0_3] : memref<239x100xf32, #tpu.memory_space<vmem>>, vector<239x100xf32>
    %cst = arith.constant dense<0.000000e+00> : vector<4x100xf32>
    %9 = tpu.matmul %7, %8, %cst {dimension_numbers = #tpu.dot_dimension_numbers<[1], [0], [0], [1], [0, 0, 1, 1], [], []>} : vector<4x239xf32>, vector<239x100xf32>, vector<4x100xf32> -> vector<4x100xf32>
    %cst_4 = arith.constant 0.000000e+00 : f32
    %10 = vector.broadcast %cst_4 : f32 to vector<4x11xf32>
    %11 = tpu.concatenate %10, %9, %10 in 1 : vector<4x11xf32>, vector<4x100xf32>, vector<4x11xf32> -> vector<4x122xf32>
    %c0_5 = arith.constant 0 : index
    %c0_6 = arith.constant 0 : index
    %12 = vector.load %arg10[%c0_5, %c0_6] : memref<4x122xf32, #tpu.memory_space<vmem>>, vector<4x122xf32>
    tpu.vector_store %arg10[%c0_5, %c0_6], %11 {strides = array<i32>} : memref<4x122xf32, #tpu.memory_space<vmem>>, vector<4x122xf32>,
    %c0_7 = arith.constant 0 : index
    %c0_8 = arith.constant 0 : index
    %13 = vector.load %arg10[%c0_7, %c0_8] : memref<4x122xf32, #tpu.memory_space<vmem>>, vector<4x100xf32>
    %c0_9 = arith.constant 0 : index
    %c1 = arith.constant 1 : index
    %14 = vector.load %arg10[%c0_9, %c1] : memref<4x122xf32, #tpu.memory_space<vmem>>, vector<4x100xf32>
    %c0_10 = arith.constant 0 : index
    %c2 = arith.constant 2 : index
    %15 = vector.load %arg10[%c0_10, %c2] : memref<4x122xf32, #tpu.memory_space<vmem>>, vector<4x100xf32>
    %c0_11 = arith.constant 0 : index
    %c10 = arith.constant 10 : index
    %16 = vector.load %arg10[%c0_11, %c10] : memref<4x122xf32, #tpu.memory_space<vmem>>, vector<4x100xf32>
    %c0_12 = arith.constant 0 : index
    %c11 = arith.constant 11 : index
    %17 = vector.load %arg10[%c0_12, %c11] : memref<4x122xf32, #tpu.memory_space<vmem>>, vector<4x100xf32>
    %c0_13 = arith.constant 0 : index
    %c12 = arith.constant 12 : index
    %18 = vector.load %arg10[%c0_13, %c12] : memref<4x122xf32, #tpu.memory_space<vmem>>, vector<4x100xf32>
    %c0_14 = arith.constant 0 : index
    %c20 = arith.constant 20 : index
    %19 = vector.load %arg10[%c0_14, %c20] : memref<4x122xf32, #tpu.memory_space<vmem>>, vector<4x100xf32>
    %c0_15 = arith.constant 0 : index
    %c21 = arith.constant 21 : index
    %20 = vector.load %arg10[%c0_15, %c21] : memref<4x122xf32, #tpu.memory_space<vmem>>, vector<4x100xf32>
    %c0_16 = arith.constant 0 : index
    %c22 = arith.constant 22 : index
    %21 = vector.load %arg10[%c0_16, %c22] : memref<4x122xf32, #tpu.memory_space<vmem>>, vector<4x100xf32>
    %22 = tpu.concatenate %13, %14, %15, %16, %17, %18, %19, %20, %21 in 0 : vector<4x100xf32>, vector<4x100xf32>, vector<4x100xf32>, vector<4x100xf32>, vector<4x100xf32>, vector<4x100xf32>, vector<4x100xf32>, vector<4x100xf32>, vector<4x100xf32> -> vector<36x100xf32>
    %c0_17 = arith.constant 0 : index
    %c0_18 = arith.constant 0 : index
    %23 = vector.load %arg3[%c0_17, %c0_18] : memref<8x36xf32, #tpu.memory_space<vmem>>, vector<8x36xf32>
    %cst_19 = arith.constant dense<0.000000e+00> : vector<8x100xf32>
    %24 = tpu.matmul %23, %22, %cst_19 {dimension_numbers = #tpu.dot_dimension_numbers<[1], [0], [0], [1], [0, 0, 1, 1], [], []>} : vector<8x36xf32>, vector<36x100xf32>, vector<8x100xf32> -> vector<8x100xf32>
    %c0_20 = arith.constant 0 : index
    %c0_21 = arith.constant 0 : index
    %25 = vector.load %arg4[%c0_20, %c0_21] : memref<8x1xf32, #tpu.memory_space<vmem>>, vector<8x1xf32>
    %26 = vector.broadcast %25 : vector<8x1xf32> to vector<8x100xf32>
    %27 = arith.addf %24, %26 : vector<8x100xf32>
    %cst_22 = arith.constant 0.000000e+00 : f32
    %28 = vector.broadcast %cst_22 : f32 to vector<8x100xf32>
    %29 = arith.maximumf %27, %28 : vector<8x100xf32>
    %c0_23 = arith.constant 0 : index
    %c0_24 = arith.constant 0 : index
    %30 = vector.load %arg7[%c0_23, %c0_24] : memref<1x100xf32, #tpu.memory_space<vmem>>, vector<1x100xf32>
    %31 = vector.broadcast %30 : vector<1x100xf32> to vector<8x100xf32>
    %32 = arith.mulf %29, %31 : vector<8x100xf32>
    %cst_25 = arith.constant 0.000000e+00 : f32
    %33 = vector.broadcast %cst_25 : f32 to vector<8x11xf32>
    %34 = tpu.concatenate %33, %32, %33 in 1 : vector<8x11xf32>, vector<8x100xf32>, vector<8x11xf32> -> vector<8x122xf32>
    %c0_26 = arith.constant 0 : index
    %c0_27 = arith.constant 0 : index
    %35 = vector.load %arg11[%c0_26, %c0_27] : memref<8x122xf32, #tpu.memory_space<vmem>>, vector<8x122xf32>
    tpu.vector_store %arg11[%c0_26, %c0_27], %34 {strides = array<i32>} : memref<8x122xf32, #tpu.memory_space<vmem>>, vector<8x122xf32>,
    %c0_28 = arith.constant 0 : index
    %c0_29 = arith.constant 0 : index
    %36 = vector.load %arg11[%c0_28, %c0_29] : memref<8x122xf32, #tpu.memory_space<vmem>>, vector<8x100xf32>
    %c0_30 = arith.constant 0 : index
    %c1_31 = arith.constant 1 : index
    %37 = vector.load %arg11[%c0_30, %c1_31] : memref<8x122xf32, #tpu.memory_space<vmem>>, vector<8x100xf32>
    %c0_32 = arith.constant 0 : index
    %c2_33 = arith.constant 2 : index
    %38 = vector.load %arg11[%c0_32, %c2_33] : memref<8x122xf32, #tpu.memory_space<vmem>>, vector<8x100xf32>
    %c0_34 = arith.constant 0 : index
    %c10_35 = arith.constant 10 : index
    %39 = vector.load %arg11[%c0_34, %c10_35] : memref<8x122xf32, #tpu.memory_space<vmem>>, vector<8x100xf32>
    %c0_36 = arith.constant 0 : index
    %c11_37 = arith.constant 11 : index
    %40 = vector.load %arg11[%c0_36, %c11_37] : memref<8x122xf32, #tpu.memory_space<vmem>>, vector<8x100xf32>
    %c0_38 = arith.constant 0 : index
    %c12_39 = arith.constant 12 : index
    %41 = vector.load %arg11[%c0_38, %c12_39] : memref<8x122xf32, #tpu.memory_space<vmem>>, vector<8x100xf32>
    %c0_40 = arith.constant 0 : index
    %c20_41 = arith.constant 20 : index
    %42 = vector.load %arg11[%c0_40, %c20_41] : memref<8x122xf32, #tpu.memory_space<vmem>>, vector<8x100xf32>
    %c0_42 = arith.constant 0 : index
    %c21_43 = arith.constant 21 : index
    %43 = vector.load %arg11[%c0_42, %c21_43] : memref<8x122xf32, #tpu.memory_space<vmem>>, vector<8x100xf32>
    %c0_44 = arith.constant 0 : index
    %c22_45 = arith.constant 22 : index
    %44 = vector.load %arg11[%c0_44, %c22_45] : memref<8x122xf32, #tpu.memory_space<vmem>>, vector<8x100xf32>
    %45 = tpu.concatenate %36, %37, %38, %39, %40, %41, %42, %43, %44 in 0 : vector<8x100xf32>, vector<8x100xf32>, vector<8x100xf32>, vector<8x100xf32>, vector<8x100xf32>, vector<8x100xf32>, vector<8x100xf32>, vector<8x100xf32>, vector<8x100xf32> -> vector<72x100xf32>
    %c0_46 = arith.constant 0 : index
    %c0_47 = arith.constant 0 : index
    %46 = vector.load %arg5[%c0_46, %c0_47] : memref<8x72xf32, #tpu.memory_space<vmem>>, vector<8x72xf32>
    %cst_48 = arith.constant dense<0.000000e+00> : vector<8x100xf32>
    %47 = tpu.matmul %46, %45, %cst_48 {dimension_numbers = #tpu.dot_dimension_numbers<[1], [0], [0], [1], [0, 0, 1, 1], [], []>} : vector<8x72xf32>, vector<72x100xf32>, vector<8x100xf32> -> vector<8x100xf32>
    %c0_49 = arith.constant 0 : index
    %c0_50 = arith.constant 0 : index
    %48 = vector.load %arg6[%c0_49, %c0_50] : memref<8x1xf32, #tpu.memory_space<vmem>>, vector<8x1xf32>
    %49 = vector.broadcast %48 : vector<8x1xf32> to vector<8x100xf32>
    %50 = arith.addf %47, %49 : vector<8x100xf32>
    %cst_51 = arith.constant 0.000000e+00 : f32
    %51 = vector.broadcast %cst_51 : f32 to vector<8x100xf32>
    %52 = arith.maximumf %50, %51 : vector<8x100xf32>
    %c0_52 = arith.constant 0 : index
    %c0_53 = arith.constant 0 : index
    %53 = vector.load %arg8[%c0_52, %c0_53] : memref<100x64xf32, #tpu.memory_space<vmem>>, vector<100x64xf32>
    %cst_54 = arith.constant dense<0.000000e+00> : vector<8x64xf32>
    %54 = tpu.matmul %52, %53, %cst_54 {dimension_numbers = #tpu.dot_dimension_numbers<[1], [0], [0], [1], [0, 0, 1, 1], [], []>} : vector<8x100xf32>, vector<100x64xf32>, vector<8x64xf32> -> vector<8x64xf32>
    %c0_55 = arith.constant 0 : index
    %c0_56 = arith.constant 0 : index
    %c0_57 = arith.constant 0 : index
    %55 = vector.load %arg9[%c0_55, %c0_56, %c0_57] : memref<1x8x64xf32, #tpu.memory_space<vmem>>, vector<1x8x64xf32>
    %56 = vector.shape_cast %55 : vector<1x8x64xf32> to vector<8x64xf32>
    %57 = vector.shape_cast %54 : vector<8x64xf32> to vector<1x8x64xf32>
    tpu.vector_store %arg9[%c0_55, %c0_56, %c0_57], %57 {strides = array<i32>} : memref<1x8x64xf32, #tpu.memory_space<vmem>>, vector<1x8x64xf32>,
    return
  }
  func.func @transform_0(%arg0: i32) -> (i32, i32, i32) {
    %c0_i32 = arith.constant 0 : i32
    %c0_i32_0 = arith.constant 0 : i32
    %c0_i32_1 = arith.constant 0 : i32
    return %arg0, %c0_i32, %c0_i32_0 : i32, i32, i32
  }
  func.func @transform_1(%arg0: i32) -> (i32, i32) {
    %c0_i32 = arith.constant 0 : i32
    %c0_i32_0 = arith.constant 0 : i32
    %c0_i32_1 = arith.constant 0 : i32
    return %c0_i32, %c0_i32_0 : i32, i32
  }
  func.func @transform_2(%arg0: i32) -> (i32, i32) {
    %c0_i32 = arith.constant 0 : i32
    %c0_i32_0 = arith.constant 0 : i32
    %c0_i32_1 = arith.constant 0 : i32
    return %c0_i32, %c0_i32_0 : i32, i32
  }
  func.func @transform_3(%arg0: i32) -> (i32, i32) {
    %c0_i32 = arith.constant 0 : i32
    %c0_i32_0 = arith.constant 0 : i32
    %c0_i32_1 = arith.constant 0 : i32
    return %c0_i32, %c0_i32_0 : i32, i32
  }
  func.func @transform_4(%arg0: i32) -> (i32, i32) {
    %c0_i32 = arith.constant 0 : i32
    %c0_i32_0 = arith.constant 0 : i32
    %c0_i32_1 = arith.constant 0 : i32
    return %c0_i32, %c0_i32_0 : i32, i32
  }
  func.func @transform_5(%arg0: i32) -> (i32, i32) {
    %c0_i32 = arith.constant 0 : i32
    %c0_i32_0 = arith.constant 0 : i32
    %c0_i32_1 = arith.constant 0 : i32
    return %c0_i32, %c0_i32_0 : i32, i32
  }
  func.func @transform_6(%arg0: i32) -> (i32, i32) {
    %c0_i32 = arith.constant 0 : i32
    %c0_i32_0 = arith.constant 0 : i32
    %c0_i32_1 = arith.constant 0 : i32
    return %c0_i32, %c0_i32_0 : i32, i32
  }
  func.func @transform_7(%arg0: i32) -> (i32, i32) {
    %c0_i32 = arith.constant 0 : i32
    %c0_i32_0 = arith.constant 0 : i32
    %c0_i32_1 = arith.constant 0 : i32
    return %c0_i32, %c0_i32_0 : i32, i32
  }
  func.func @transform_8(%arg0: i32) -> (i32, i32, i32) {
    %c0_i32 = arith.constant 0 : i32
    %c0_i32_0 = arith.constant 0 : i32
    %c0_i32_1 = arith.constant 0 : i32
    return %arg0, %c0_i32, %c0_i32_0 : i32, i32, i32
  }
}

</mosaic_0001>

<bundles_post_ra>
// kernel: down_forward.1
= control target key start
LH: loop header
LB: loop body
LE: loop exit
PB: predicated region body
PF: predicated region fallthrough
CT: control target
= control target key end

     0   :  { %s1024_s27 = smov 0   ;;  %s1289_s0 = inlined_call_operand.vmem [shape: f32[2,4,256], index: 0, kind: input, shape index: {}]   ;;  %s1290_s1 = inlined_call_operand.vmem [shape: f32[239,100], index: 1, kind: input, shape index: {}]   ;;  %s1291_s2 = inlined_call_operand.vmem [shape: f32[8,36], index: 2, kind: input, shape index: {}]   ;;  %s1292_s3 = inlined_call_operand.vmem [shape: f32[8,1], index: 3, kind: input, shape index: {}]   ;;  %s1293_s4 = inlined_call_operand.vmem [shape: f32[8,72], index: 4, kind: input, shape index: {}]   ;;  %s1294_s5 = inlined_call_operand.vmem [shape: f32[8,1], index: 5, kind: input, shape index: {}]   ;;  %s1295_s6 = inlined_call_operand.vmem [shape: f32[1,100], index: 6, kind: input, shape index: {}]   ;;  %s1296_s7 = inlined_call_operand.vmem [shape: f32[100,64], index: 7, kind: input, shape index: {}]   ;;  %s1297_s8 = inlined_call_operand.vmem [shape: f32[2,8,64], index: 8, kind: output, shape index: {}]  }
   0x1 LB: > { %s823_s28 = sadd.s32 4294967295, %s964_s27   ;;  %p827_p0 = scmp.ge.s32.totalorder %s964_s27, 1  ;;  %s964_s27 = sphi %s1024_s27, %s18_s27  }
   0x2   : > { %p262_p1 = scmp.lt.s32.totalorder %s964_s27, 3 }
   0x4   : > { %p263_p2 = pnand %p827_p0, %p262_p1 }
   0x5   : > { %p295_p3 = scmp.lt.s32.totalorder (!%p263_p2), %s823_s28, 1  ;;  %s967_s19 = smov (!%p263_p2), 127  }
   0x6   : > { %266 = sbr.rel (%p263_p2) target bundleno = 1555 (0x613), region = 52  ;;  %s968_s17 = smov (!%p263_p2), 112  }
   0x7   : > { %s969_s18 = smov (!%p263_p2), 11   ;;  %s970_s20 = smov (!%p263_p2), 108  }
   0x8   : > { %s971_s21 = smov (!%p263_p2), 106   ;;  %s973_s22 = smov (!%p263_p2), 117  }
   0x9   : > { %s974_s23 = smov (!%p263_p2), 107   ;;  %s976_s24 = smov (!%p263_p2), 126  }
   0xa   : > { %s977_s25 = smov (!%p263_p2), 116   ;;  %s978_s26 = smov (!%p263_p2), 118  }
   0xb   : > { %v336_v0 = vld [vmem:[%s1290_s1 + $0x78] sm:$0xff]  ;;  %v966_v1 = vmov 0.0   ;;  %v335_v2 = vld [vmem:[%s1290_s1 + $0x70] sm:$0xff]  ;;  %s1299_s28 = smov (!%p295_p3, %s823_s28), 1  ;;  %v334_v3 = vld [vmem:[%s1290_s1 + $0x68] sm:$0xff]  ;;  %vm356_vm0 = vcmask 1046528  }
   0xc   : > { %360 = vmatprep.subr.mxu0 %v966_v1  ;;  %872 = vmatprep.subr.mxu1 %v966_v1  ;;  %s841_s13 = sshll.u32 %s1299_s28, 3  ;;  %v333_v4 = vld [vmem:[%s1290_s1 + $0x60] sm:$0xff]  ;;  %v332_v6 = vld [vmem:[%s1290_s1 + $0x58] sm:$0xff]  ;;  %v331_v7 = vld [vmem:[%s1290_s1 + $0x50] sm:$0xff]  ;;  %vm309_vm1 = vcmask 1039360   ;;  %vm317_vm2 = vcmask 916480  }
   0xd   : > { %361 = vmatpush1.msra.mxu0 %v336_v0  ;;  %s299_s16 = scalar_lea.vmem %s1289_s0, %s841_s13  ;;  %v330_v8 = vld [vmem:[%s1290_s1 + $0x48] sm:$0xff]  ;;  %v329_v9 = vld [vmem:[%s1290_s1 + $0x40] sm:$0xff]  ;;  %v328_v10 = vld [vmem:[%s1290_s1 + $0x38] sm:$0xff]  ;;  %vm353_vm3 = vcmask 908288   ;;  %vm434_vm4 = vcmask 89088   ;;  %vm437_vm5 = vcmask 994304   ;;  %s303_s29 = scalar_lea.vmem %s1297_s8, %s841_s13 }
   0xe   : > { %362 = vmatprep.subr.mxu0 %v966_v1  ;;  %v1056_v5 = vld [vmem:[%s299_s16] sm:$0xff]  ;;  %v327_v11 = vld [vmem:[%s1290_s1 + $0x30] sm:$0xff]  ;;  %v326_v12 = vld [vmem:[%s1290_s1 + $0x28] sm:$0xff]  ;;  %vm972_vm6 = vmmov 0   ;;  %v975_v48 = vmov 0   ;;  %vm465_vm7 = vcmask 1043456  }
   0xf   : > { %363 = vmatpush1.msra.mxu0 %v335_v2  ;;  %306 = vrot.lane.b32.xlu0 %v1056_v5, %s967_s19  ;;  %v325_v13 = vld [vmem:[%s1290_s1 + $0x20] sm:$0xff]  ;;  %v324_v14 = vld [vmem:[%s1290_s1 + $0x18] sm:$0xff]  ;;  %v323_v15 = vld [vmem:[%s1290_s1 + $0x10] sm:$0xff]  ;;  %vm477_vm8 = vcmask 293888   ;;  %vm568_vm9 = vcmask 998400   ;;  %vm603_vm10 = vcmask 588800  }
  0x10   : > { %364 = vmatprep.subr.mxu0 %v966_v1  ;;  %v322_v16 = vld [vmem:[%s1290_s1 + $0x8] sm:$0xff]  ;;  %v321_v17 = vld [vmem:[%s1290_s1] sm:$0xff]  ;;  %v348_v20 = vld [vmem:[%s1290_s1 + $0xd8] sm:$0xff]  ;;  %882 = vmatprep.mubr.msk.f32.mxu1 %vm972_vm6, %v966_v1  ;;  %vm691_vm11 = vcmask 818176   ;;  %vm768_vm12 = vcmask 523264  }
  0x11   : > { %365 = vmatpush1.msra.mxu0 %v334_v3  ;;  %v350_v18 = vld [vmem:[%s1290_s1 + $0xe8] sm:$0x7f]  ;;  %v349_v19 = vld [vmem:[%s1290_s1 + $0xe0] sm:$0xff]  ;;  %v347_v21 = vld [vmem:[%s1290_s1 + $0xd0] sm:$0xff]  ;;  %956 = vset.pattern.permute.xlu1 %v975_v48 }
  0x12   : > { %366 = vmatprep.subr.mxu0 %v966_v1  ;;  %v346_v22 = vld [vmem:[%s1290_s1 + $0xc8] sm:$0xff]  ;;  %v345_v23 = vld [vmem:[%s1290_s1 + $0xc0] sm:$0xff]  ;;  %v344_v24 = vld [vmem:[%s1290_s1 + $0xb8] sm:$0xff]  ;;  %957 = vset.pattern.permute.xlu0 %v975_v48 }
  0x13   : > { %367 = vmatpush1.msra.mxu0 %v333_v4  ;;  %v343_v25 = vld [vmem:[%s1290_s1 + $0xb0] sm:$0xff]  ;;  %v342_v26 = vld [vmem:[%s1290_s1 + $0xa8] sm:$0xff]  ;;  %v341_v27 = vld [vmem:[%s1290_s1 + $0xa0] sm:$0xff] }
  0x14   : > { %368 = vmatprep.subr.mxu0 %v966_v1  ;;  %v340_v28 = vld [vmem:[%s1290_s1 + $0x98] sm:$0xff]  ;;  %v339_v29 = vld [vmem:[%s1290_s1 + $0x90] sm:$0xff]  ;;  %v338_v30 = vld [vmem:[%s1290_s1 + $0x88] sm:$0xff] }
  0x15   : > { %369 = vmatpush1.msra.mxu0 %v332_v6  ;;  %v337_v31 = vld [vmem:[%s1290_s1 + $0x80] sm:$0xff] }
  0x16   : > { %370 = vmatprep.subr.mxu0 %v966_v1  ;;  %v471_v49 = vld [vmem:[%s1292_s3] sm:$0xff] }
  0x17   : > { %371 = vmatpush1.msra.mxu0 %v331_v7  ;;  %v470_v61 = vld [vmem:[%s1291_s2] sm:$0xff] }
  0x18   : > { %372 = vmatprep.subr.mxu0 %v966_v1  ;;  %v835_v3 = vld [vmem:[%s1295_s6] ss:$0 sm:$0xff] }
  0x19   : > { %373 = vmatpush1.msra.mxu0 %v330_v8 }
  0x1a   : > { %374 = vmatprep.subr.mxu0 %v966_v1 }
  0x1b   : > { %375 = vmatpush1.msra.mxu0 %v329_v9 }
  0x1c   : > { %376 = vmatprep.subr.mxu0 %v966_v1 }
  0x1d   : > { %377 = vmatpush1.msra.mxu0 %v328_v10 }
  0x1e   : > { %378 = vmatprep.subr.mxu0 %v966_v1 }
  0x1f   : > { %379 = vmatpush1.msra.mxu0 %v327_v11  ;;  %v597_v11 = vld [vmem:[%s1294_s5] sm:$0xff] }
  0x20   : > { %380 = vmatprep.subr.mxu0 %v966_v1 }
  0x21   : > { %381 = vmatpush1.msra.mxu0 %v326_v12 }
  0x22   : > { %382 = vmatprep.subr.mxu0 %v966_v1 }
  0x23   : > { %383 = vmatpush1.msra.mxu0 %v325_v13 }
  0x24   : > { %384 = vmatprep.subr.mxu0 %v966_v1 }
  0x25   : > { %385 = vmatpush1.msra.mxu0 %v324_v14 }
  0x26   : > { %386 = vmatprep.subr.mxu0 %v966_v1 }
  0x27   : > { %387 = vmatpush1.msra.mxu0 %v323_v15 }
  0x28   : > { %388 = vmatprep.subr.mxu0 %v966_v1 }
  0x29   : > { %389 = vmatpush1.msra.mxu0 %v322_v16 }
  0x2a   : > { %390 = vmatprep.subr.mxu0 %v966_v1 }
  0x2b   : > { %391 = vmatpush1.msra.mxu0 %v321_v17 }
  0x2c   : > { %396 = vmatprep.subr.mxu0 %v966_v1 }
  0x2d   : > { %831 = vmatpush2.msk.msra.mxu0 %vm356_vm0, %v350_v18 }
  0x2e   : > { %398 = vmatprep.subr.mxu0 %v966_v1 }
  0x2f   : > { %399 = vmatpush2.msra.mxu0 %v349_v19 }
  0x30   : > { %400 = vmatprep.subr.mxu0 %v966_v1 }
  0x31   : > { %401 = vmatpush2.msra.mxu0 %v348_v20  ;;  %v596_v20 = vld [vmem:[%s1293_s4] sm:$0xff] }
  0x32   : > { %402 = vmatprep.subr.mxu0 %v966_v1 }
  0x33   : > { %403 = vmatpush2.msra.mxu0 %v347_v21  ;;  %v690_v21 = vld [vmem:[%s1296_s7 + $0x60] sm:$0xf] }
  0x34   : > { %404 = vmatprep.subr.mxu0 %v966_v1 }
  0x35   : > { %405 = vmatpush2.msra.mxu0 %v346_v22  ;;  %v689_v22 = vld [vmem:[%s1296_s7 + $0x58] sm:$0xff] }
  0x36   : > { %406 = vmatprep.subr.mxu0 %v966_v1 }
  0x37   : > { %407 = vmatpush2.msra.mxu0 %v345_v23  ;;  %v688_v23 = vld [vmem:[%s1296_s7 + $0x50] sm:$0xff] }
  0x38   : > { %408 = vmatprep.subr.mxu0 %v966_v1 }
  0x39   : > { %409 = vmatpush2.msra.mxu0 %v344_v24  ;;  %v687_v24 = vld [vmem:[%s1296_s7 + $0x48] sm:$0xff] }
  0x3a   : > { %410 = vmatprep.subr.mxu0 %v966_v1 }
  0x3b   : > { %411 = vmatpush2.msra.mxu0 %v343_v25  ;;  %v686_v25 = vld [vmem:[%s1296_s7 + $0x40] sm:$0xff] }
  0x3c   : > { %412 = vmatprep.subr.mxu0 %v966_v1 }
  0x3d   : > { %413 = vmatpush2.msra.mxu0 %v342_v26  ;;  %v685_v26 = vld [vmem:[%s1296_s7 + $0x38] sm:$0xff] }
  0x3e   : > { %414 = vmatprep.subr.mxu0 %v966_v1 }
  0x3f   : > { %415 = vmatpush2.msra.mxu0 %v341_v27  ;;  %v684_v27 = vld [vmem:[%s1296_s7 + $0x30] sm:$0xff] }
  0x40   : > { %416 = vmatprep.subr.mxu0 %v966_v1 }
  0x41   : > { %417 = vmatpush2.msra.mxu0 %v340_v28  ;;  %v683_v28 = vld [vmem:[%s1296_s7 + $0x28] sm:$0xff] }
  0x42   : > { %418 = vmatprep.subr.mxu0 %v966_v1 }
  0x43   : > { %419 = vmatpush2.msra.mxu0 %v339_v29  ;;  %v682_v29 = vld [vmem:[%s1296_s7 + $0x20] sm:$0xff] }
  0x44   : > { %420 = vmatprep.subr.mxu0 %v966_v1 }
  0x45   : > { %421 = vmatpush2.msra.mxu0 %v338_v30  ;;  %v681_v30 = vld [vmem:[%s1296_s7 + $0x18] sm:$0xff] }
  0x46   : > { %422 = vmatprep.subr.mxu0 %v966_v1 }
  0x47   : > { %423 = vmatpush2.msra.mxu0 %v337_v31  ;;  %v680_v31 = vld [vmem:[%s1296_s7 + $0x10] sm:$0xff] }
  0x81   : > { %v307_v32 = vpop.permute.xlu0 %306 }
  0x82   : > { %v308_v33 = vrot.slane %v307_v32, 4 }
  0x84   : > { %v310_v34 = vsel %vm309_vm1, %v307_v32, %v308_v33  ;;  %v679_v32 = vld [vmem:[%s1296_s7 + $0x8] sm:$0xff]  ;;  %v678_v33 = vld [vmem:[%s1296_s7] sm:$0xff] }
  0x85   : > { %v312_v35 = vmax.f32 %v1056_v5, %v310_v34 }
  0x87   : > { %314 = vrot.lane.b32.xlu0 %v312_v35, %s968_s17 }
  0xf9   : > { %v315_v36 = vpop.permute.xlu0 %314 }
  0xfa   : > { %v316_v37 = vrot.slane %v315_v36, 4 }
  0xfc   : > { %v318_v38 = vsel %vm317_vm2, %v315_v36, %v316_v37 }
  0xfd   : > { %v320_v39 = vmax.f32 %v312_v35, %v318_v38 }
  0xff   : > { %v352_v40 = vcombine.high %v320_v39, %v320_v39 }
 0x101   : > { %832 = vmatprep.mubr.msk.f32.mxu0 %vm353_vm3, %v352_v40 }
 0x102   : > { %425 = vmatmul.mubr.f32.vlgmr.msra.gmra.mxu0 %v320_v39 }
 0x1c2   : > { %v426_v41 = vpop.f32.mrf.mxu0 }
 0x1c3   : > { %431 = vrot.lane.b32.xlu1 %v426_v41, %s969_s18 }
 0x1c4   : > { %v428_v42 = vpop.f32.mrf.mxu0 }
 0x235   : > { %v432_v43 = vpop.permute.xlu1 %431 }
 0x236   : > { %v435_v44 = vsel %vm434_vm4, 0.0, %v432_v43 }
 0x237   : > { %v436_v45 = vsel %vm353_vm3, %v435_v44, 0.0 }
 0x238   : > { %438 = vst.msk [vmem:[#allocation2] sm:$0xf] %vm437_vm5, %v436_v45 }
 0x23f   : > { %v439_v46 = vld [vmem:[#allocation2] sm:$0xf] }
 0x240   : > { %457 = vrot.lane.b32.xlu0 %v439_v46, %s970_s20  ;;  %463 = vrot.lane.b32.xlu1 %v439_v46, %s971_s21  ;;  %v441_v47 = vrot.slane %v439_v46, 4 }
 0x244   : > { %451 = vrot.lane.b32.xlu0 %v439_v46, %s973_s22  ;;  %460 = vrot.lane.b32.xlu1 %v441_v47, %s974_s23 }
 0x248   : > { %445 = vrot.lane.b32.xlu0 %v439_v46, %s976_s24  ;;  %454 = vrot.lane.b32.xlu1 %v441_v47, %s977_s25 }
 0x24c   : > { %442 = vrot.lane.b32.xlu0 %v441_v47, %s967_s19  ;;  %448 = vrot.lane.b32.xlu1 %v441_v47, %s978_s26 }
 0x250   : > { %474 = vperm.xlu1 %956, %v471_v49  }
 0x2b2   : > { %v458_v50 = vpop.permute.xlu0 %457  ;;  %v464_v51 = vpop.permute.xlu1 %463 }
 0x2b3   : > { %873 = vmatpush3.msk.msra.mxu1 %vm465_vm7, %v464_v51 }
 0x2b4   : > { %874 = vmatprep.subr.mxu1 %v966_v1 }
 0x2b6   : > { %v452_v52 = vpop.permute.xlu0 %451  ;;  %v461_v53 = vpop.permute.xlu1 %460 }
 0x2b7   : > { %v469_v54 = vsel %vm465_vm7, %v458_v50, %v461_v53 }
 0x2b8   : > { %875 = vmatpush3.msra.mxu1 %v469_v54 }
 0x2b9   : > { %876 = vmatprep.subr.mxu1 %v966_v1 }
 0x2ba   : > { %v446_v55 = vpop.permute.xlu0 %445  ;;  %v455_v56 = vpop.permute.xlu1 %454 }
 0x2bb   : > { %v468_v57 = vsel %vm465_vm7, %v452_v52, %v455_v56 }
 0x2bc   : > { %877 = vmatpush3.msra.mxu1 %v468_v57 }
 0x2bd   : > { %878 = vmatprep.subr.mxu1 %v966_v1 }
 0x2be   : > { %v443_v58 = vpop.permute.xlu0 %442  ;;  %v449_v59 = vpop.permute.xlu1 %448 }
 0x2bf   : > { %v467_v60 = vsel %vm465_vm7, %v446_v55, %v449_v59  ;;  %v466_v62 = vsel %vm465_vm7, %v439_v46, %v443_v58 }
 0x2c0   : > { %879 = vmatpush3.msra.mxu1 %v467_v60 }
 0x2c1   : > { %880 = vmatprep.subr.mxu1 %v966_v1 }
 0x2c2   : > { %881 = vmatpush3.msra.mxu1 %v466_v62 }
 0x2c3   : > { %883 = vmatmul.mubr.msk.f32.vlgmr.msra.gmra.mxu1 %vm477_vm8, %v470_v61  ;;  %885 = vmatprep.subr.mxu1 %v966_v1 }
 0x2c4   : > { %903 = vmatprep.mubr.msk.f32.mxu1 %vm972_vm6, %v966_v1 }
 0x2cb   : > { %v475_v63 = vpop.permute.xlu1 %474 }
 0x383   : > { %v549_v0 = vpop.f32.mrf.mxu1 }
 0x384   : > { %v550_v2 = vadd.f32 %v549_v0, %v475_v63 }
 0x385   : > { %v884_v4 = vpop.f32.mrf.mxu1 }
 0x386   : > { %v553_v5 = vmax.f32 %v550_v2, 0.0 }
 0x388   : > { %v561_v6 = vmul.f32 %v835_v3, %v553_v5 }
 0x38a   : > { %563 = vrot.lane.b32.xlu0 %v561_v6, %s969_s18 }
 0x3fc   : > { %v564_v7 = vpop.permute.xlu0 %563 }
 0x3fd   : > { %v566_v8 = vsel %vm434_vm4, 0.0, %v564_v7 }
 0x3fe   : > { %v567_v9 = vsel %vm353_vm3, %v566_v8, 0.0 }
 0x3ff   : > { %569 = vst.msk [vmem:[#allocation3] sm:$0xff] %vm568_vm9, %v567_v9 }
 0x406   : > { %v570_v10 = vld [vmem:[#allocation3] sm:$0xff] }
 0x407   : > { %590 = vrot.lane.b32.xlu0 %v570_v10, %s974_s23  ;;  %593 = vrot.lane.b32.xlu1 %v570_v10, %s971_s21 }
 0x40b   : > { %584 = vrot.lane.b32.xlu0 %v570_v10, %s977_s25  ;;  %587 = vrot.lane.b32.xlu1 %v570_v10, %s970_s20 }
 0x40f   : > { %578 = vrot.lane.b32.xlu0 %v570_v10, %s978_s26  ;;  %581 = vrot.lane.b32.xlu1 %v570_v10, %s973_s22 }
 0x413   : > { %572 = vrot.lane.b32.xlu0 %v570_v10, %s967_s19  ;;  %575 = vrot.lane.b32.xlu1 %v570_v10, %s976_s24 }
 0x417   : > { %600 = vperm.xlu1 %956, %v597_v11  }
 0x479   : > { %v591_v12 = vpop.permute.xlu0 %590  ;;  %v594_v13 = vpop.permute.xlu1 %593 }
 0x47a   : > { %886 = vmatpush3.msra.mxu1 %v594_v13 }
 0x47b   : > { %887 = vmatprep.subr.mxu1 %v966_v1 }
 0x47c   : > { %888 = vmatpush3.msra.mxu1 %v591_v12 }
 0x47d   : > { %v585_v14 = vpop.permute.xlu0 %584  ;;  %889 = vmatprep.subr.mxu1 %v966_v1  ;;  %v588_v15 = vpop.permute.xlu1 %587 }
 0x47e   : > { %890 = vmatpush3.msra.mxu1 %v588_v15 }
 0x47f   : > { %891 = vmatprep.subr.mxu1 %v966_v1 }
 0x480   : > { %892 = vmatpush3.msra.mxu1 %v585_v14 }
 0x481   : > { %v579_v16 = vpop.permute.xlu0 %578  ;;  %893 = vmatprep.subr.mxu1 %v966_v1  ;;  %v582_v17 = vpop.permute.xlu1 %581 }
 0x482   : > { %894 = vmatpush3.msra.mxu1 %v582_v17 }
 0x483   : > { %895 = vmatprep.subr.mxu1 %v966_v1 }
 0x484   : > { %896 = vmatpush3.msra.mxu1 %v579_v16 }
 0x485   : > { %897 = vmatprep.subr.mxu1 %v966_v1  ;;  %v576_v18 = vpop.permute.xlu1 %575  ;;  %v573_v19 = vpop.permute.xlu0 %572 }
 0x486   : > { %898 = vmatpush3.msra.mxu1 %v576_v18 }
 0x487   : > { %899 = vmatprep.subr.mxu1 %v966_v1 }
 0x488   : > { %900 = vmatpush3.msra.mxu1 %v573_v19 }
 0x489   : > { %901 = vmatprep.subr.mxu1 %v966_v1 }
 0x48a   : > { %902 = vmatpush3.msra.mxu1 %v570_v10 }
 0x48b   : > { %904 = vmatmul.mubr.msk.f32.vlgmr.msra.gmra.mxu1 %vm603_vm10, %v596_v20  ;;  %906 = vmatprep.subr.mxu1 %v966_v1 }
 0x48c   : > { %907 = vmatpush3.msk.msra.mxu1 %vm465_vm7, %v690_v21  ;;  %932 = vmatprep.mubr.msk.f32.mxu1 %vm972_vm6, %v966_v1 }
 0x48d   : > { %908 = vmatprep.subr.mxu1 %v966_v1 }
 0x48e   : > { %909 = vmatpush3.msra.mxu1 %v689_v22 }
 0x48f   : > { %910 = vmatprep.subr.mxu1 %v966_v1 }
 0x490   : > { %911 = vmatpush3.msra.mxu1 %v688_v23 }
 0x491   : > { %912 = vmatprep.subr.mxu1 %v966_v1 }
 0x492   : > { %913 = vmatpush3.msra.mxu1 %v687_v24  ;;  %v601_v34 = vpop.permute.xlu1 %600 }
 0x493   : > { %914 = vmatprep.subr.mxu1 %v966_v1 }
 0x494   : > { %915 = vmatpush3.msra.mxu1 %v686_v25 }
 0x495   : > { %916 = vmatprep.subr.mxu1 %v966_v1 }
 0x496   : > { %917 = vmatpush3.msra.mxu1 %v685_v26 }
 0x497   : > { %918 = vmatprep.subr.mxu1 %v966_v1 }
 0x498   : > { %919 = vmatpush3.msra.mxu1 %v684_v27 }
 0x499   : > { %920 = vmatprep.subr.mxu1 %v966_v1 }
 0x49a   : > { %921 = vmatpush3.msra.mxu1 %v683_v28 }
 0x49b   : > { %922 = vmatprep.subr.mxu1 %v966_v1 }
 0x49c   : > { %923 = vmatpush3.msra.mxu1 %v682_v29 }
 0x49d   : > { %924 = vmatprep.subr.mxu1 %v966_v1 }
 0x49e   : > { %925 = vmatpush3.msra.mxu1 %v681_v30 }
 0x49f   : > { %926 = vmatprep.subr.mxu1 %v966_v1 }
 0x4a0   : > { %927 = vmatpush3.msra.mxu1 %v680_v31 }
 0x4a1   : > { %928 = vmatprep.subr.mxu1 %v966_v1 }
 0x4a2   : > { %929 = vmatpush3.msra.mxu1 %v679_v32 }
 0x4a3   : > { %930 = vmatprep.subr.mxu1 %v966_v1 }
 0x4a4   : > { %931 = vmatpush3.msra.mxu1 %v678_v33 }
 0x54b   : > { %v673_v35 = vpop.f32.mrf.mxu1 }
 0x54c   : > { %v674_v36 = vadd.f32 %v673_v35, %v601_v34 }
 0x54d   : > { %v905_v37 = vpop.f32.mrf.mxu1 }
 0x54e   : > { %v677_v38 = vmax.f32 %v674_v36, 0.0 }
 0x550   : > { %933 = vmatmul.mubr.msk.f32.vlgmr.msra.gmra.mxu1 %vm691_vm11, %v677_v38 }
 0x610   : > { %v764_v39 = vpop.f32.mrf.mxu1 }
 0x611   : > { %769 = vst.msk [vmem:[%s303_s29] sm:$0xff] %vm768_vm12, %v764_v39 }
 0x612   : > { %v934_v1 = vpop.f32.mrf.mxu1 }
 0x613 PF: > { %s18_s27 = sadd.s32 1, %s964_s27  }
 0x614   : > { %p15_p4 = scmp.ge.s32.totalorder %s18_s27, 4  }
 0x616   :  { %17 = sbr.rel (!%p15_p4) target bundleno = 1 (0x1), region = 82 }

</bundles_post_ra>
